<compile_context>
chip_gen: v5e
topology: v5e:2x2
jax: 0.10.0
libtpu: 0.0.40
codegen_flags: <defaults>
</compile_context>

<pallas_src>
import jax
import jax.numpy as jnp
from jax.experimental import pallas as pl
from jax.experimental.pallas import tpu as pltpu

KH = KW = 3          # MaxPool2d kernel_size=(3, 3)
SH = SW = 3          # default stride == kernel_size (non-overlapping windows)


def _ceil_out(size, k, s):
    # PyTorch output size with ceil_mode=True, padding=0, dilation=1.
    # Valid here because stride == kernel_size, so every window starts
    # in-bounds and contains at least one valid element.
    return -(-(size - k) // s) + 1


def _make_kernel(h, w, oh, ow):
    fh = max(0, (h - KH) // SH + 1)   # number of full-height windows
    fw = max(0, (w - KW) // SW + 1)   # number of full-width windows

    def kernel(x_ref, o_ref, hp_ref):
        # x_ref : (G, H, W)   input planes (one (n, c) plane per leading index)
        # o_ref : (G, OH, OW) pooled output
        # hp_ref: (G, W, OH)  scratch: H-pooled rows, stored transposed so the
        #                     W reduction is a sublane-strided load too.

        # ---- pool along H: sublane-strided loads + elementwise max ----
        if fh > 0:
            r = jnp.maximum(
                jnp.maximum(x_ref[:, pl.ds(0, fh, stride=SH), :],
                            x_ref[:, pl.ds(1, fh, stride=SH), :]),
                x_ref[:, pl.ds(2, fh, stride=SH), :])            # (G, fh, W)
            hp_ref[:, :, 0:fh] = jnp.swapaxes(r, 1, 2)
        if fh < oh:                  # ragged bottom window (1 or 2 valid rows)
            base = SH * fh
            t = x_ref[:, base:base + 1, :]
            for extra in range(1, h - base):
                t = jnp.maximum(t, x_ref[:, base + extra:base + extra + 1, :])
            hp_ref[:, :, fh:oh] = jnp.swapaxes(t, 1, 2)

        # ---- pool along W (now the second-minor axis of the scratch) ----
        if fw > 0:
            c = jnp.maximum(
                jnp.maximum(hp_ref[:, pl.ds(0, fw, stride=SW), :],
                            hp_ref[:, pl.ds(1, fw, stride=SW), :]),
                hp_ref[:, pl.ds(2, fw, stride=SW), :])           # (G, fw, OH)
            o_ref[:, :, 0:fw] = jnp.swapaxes(c, 1, 2).astype(o_ref.dtype)
        if fw < ow:                  # ragged right window (1 or 2 valid cols)
            base = SW * fw
            t = hp_ref[:, base:base + 1, :]
            for extra in range(1, w - base):
                t = jnp.maximum(t, hp_ref[:, base + extra:base + extra + 1, :])
            o_ref[:, :, fw:ow] = jnp.swapaxes(t, 1, 2).astype(o_ref.dtype)

    return kernel


def _pick_group(b, plane_bytes):
    # Planes per grid step: target ~2 MiB input blocks (well under the default
    # scoped VMEM on v5e/v6e/v7x even with double buffering) while keeping the
    # grid extent >= 2 so both TensorCores get work on megacore parts.
    target = max(1, (2 * 1024 * 1024) // max(1, plane_bytes))
    if b >= 2:
        target = min(target, b // 2)
    g = 1
    for d in range(1, b + 1):
        if b % d == 0 and d <= target:
            g = d
    return g


@jax.jit
def maxpool2d_ceil(x_nchw):
    """Equivalent of K().forward(ip) for NCHW input."""
    n, c, h, w = x_nchw.shape
    oh = _ceil_out(h, KH, SH)
    ow = _ceil_out(w, KW, SW)
    b = n * c
    x3 = x_nchw.reshape(b, h, w)          # contiguous merge of leading dims (free)
    g = _pick_group(b, h * w * x_nchw.dtype.itemsize)

    out3 = pl.pallas_call(
        _make_kernel(h, w, oh, ow),
        out_shape=jax.ShapeDtypeStruct((b, oh, ow), x_nchw.dtype),
        grid=(b // g,),
        in_specs=[pl.BlockSpec((g, h, w), lambda i: (i, 0, 0))],
        out_specs=pl.BlockSpec((g, oh, ow), lambda i: (i, 0, 0)),
        scratch_shapes=[pltpu.VMEM((g, w, oh), x_nchw.dtype)],
        compiler_params=pltpu.CompilerParams(
            dimension_semantics=("parallel",),
            vmem_limit_bytes=32 * 1024 * 1024),
    )(x3)
    return out3.reshape(n, c, oh, ow)


if __name__ == "__main__":
    key = jax.random.PRNGKey(0)
    ip = jax.random.normal(key, (2, 4, 16, 16), dtype=jnp.float32)

    out = maxpool2d_ceil(ip)
    jax.block_until_ready(out)

    # Reference: identical pooling semantics via lax.reduce_window (-inf pad
    # on the bottom/right emulates ceil_mode with non-overlapping windows).
    oh = _ceil_out(ip.shape[2], KH, SH)
    ow = _ceil_out(ip.shape[3], KW, SW)
    ref = jax.lax.reduce_window(
        ip, -jnp.inf, jax.lax.max,
        window_dimensions=(1, 1, KH, KW),
        window_strides=(1, 1, SH, SW),
        padding=((0, 0), (0, 0),
                 (0, oh * SH - ip.shape[2]), (0, ow * SW - ip.shape[3])),
    )

    assert out.shape == (2, 4, oh, ow), out.shape        # (2, 4, 6, 6)
    assert out.dtype == ip.dtype
    assert jnp.allclose(out, ref), "mismatch vs reference max pool"
    print("KERNEL_OK")
</pallas_src>

<mosaic_0001>
module attributes {stable_mosaic.version = 11 : i64} {
  func.func @kernel(%arg0: i32, %arg1: memref<4x16x16xf32, #tpu.memory_space<vmem>>, %arg2: memref<4x6x6xf32, #tpu.memory_space<vmem>>, %arg3: memref<4x16x6xf32, #tpu.memory_space<vmem>>) attributes {dimension_semantics = [#tpu.dimension_semantics<parallel>], iteration_bounds = array<i64: 2>, scalar_prefetch = 0 : i64, scratch_operands = 1 : i64, tpu.core_type = #tpu.core_type<tc>, window_params = [{transform_indices = @transform_0, window_bounds = array<i64: 4, 16, 16>}, {transform_indices = @transform_1, window_bounds = array<i64: 4, 6, 6>}]} {
    %c0 = arith.constant 0 : index
    %c0_0 = arith.constant 0 : index
    %c0_1 = arith.constant 0 : index
    %0 = tpu.strided_load %arg1[%c0, %c0_0, %c0_1] {strides = array<i32: 1, 3, 1>} : memref<4x16x16xf32, #tpu.memory_space<vmem>>, vector<4x5x16xf32>
    %c0_2 = arith.constant 0 : index
    %c1 = arith.constant 1 : index
    %c0_3 = arith.constant 0 : index
    %1 = tpu.strided_load %arg1[%c0_2, %c1, %c0_3] {strides = array<i32: 1, 3, 1>} : memref<4x16x16xf32, #tpu.memory_space<vmem>>, vector<4x5x16xf32>
    %2 = arith.maximumf %0, %1 : vector<4x5x16xf32>
    %c0_4 = arith.constant 0 : index
    %c2 = arith.constant 2 : index
    %c0_5 = arith.constant 0 : index
    %3 = tpu.strided_load %arg1[%c0_4, %c2, %c0_5] {strides = array<i32: 1, 3, 1>} : memref<4x16x16xf32, #tpu.memory_space<vmem>>, vector<4x5x16xf32>
    %4 = arith.maximumf %2, %3 : vector<4x5x16xf32>
    %5 = tpu.transpose %4, [0, 2, 1] : vector<4x5x16xf32> -> vector<4x16x5xf32>
    %c0_6 = arith.constant 0 : index
    %c0_7 = arith.constant 0 : index
    %c0_8 = arith.constant 0 : index
    %6 = vector.load %arg3[%c0_6, %c0_7, %c0_8] : memref<4x16x6xf32, #tpu.memory_space<vmem>>, vector<4x16x5xf32>
    tpu.vector_store %arg3[%c0_6, %c0_7, %c0_8], %5 {strides = array<i32>} : memref<4x16x6xf32, #tpu.memory_space<vmem>>, vector<4x16x5xf32>,
    %c0_9 = arith.constant 0 : index
    %c15 = arith.constant 15 : index
    %c0_10 = arith.constant 0 : index
    %7 = vector.load %arg1[%c0_9, %c15, %c0_10] : memref<4x16x16xf32, #tpu.memory_space<vmem>>, vector<4x1x16xf32>
    %8 = tpu.transpose %7, [0, 2, 1] : vector<4x1x16xf32> -> vector<4x16x1xf32>
    %c0_11 = arith.constant 0 : index
    %c0_12 = arith.constant 0 : index
    %c5 = arith.constant 5 : index
    %9 = vector.load %arg3[%c0_11, %c0_12, %c5] : memref<4x16x6xf32, #tpu.memory_space<vmem>>, vector<4x16x1xf32>
    tpu.vector_store %arg3[%c0_11, %c0_12, %c5], %8 {strides = array<i32>} : memref<4x16x6xf32, #tpu.memory_space<vmem>>, vector<4x16x1xf32>,
    %c0_13 = arith.constant 0 : index
    %c0_14 = arith.constant 0 : index
    %c0_15 = arith.constant 0 : index
    %10 = tpu.strided_load %arg3[%c0_13, %c0_14, %c0_15] {strides = array<i32: 1, 3, 1>} : memref<4x16x6xf32, #tpu.memory_space<vmem>>, vector<4x5x6xf32>
    %c0_16 = arith.constant 0 : index
    %c1_17 = arith.constant 1 : index
    %c0_18 = arith.constant 0 : index
    %11 = tpu.strided_load %arg3[%c0_16, %c1_17, %c0_18] {strides = array<i32: 1, 3, 1>} : memref<4x16x6xf32, #tpu.memory_space<vmem>>, vector<4x5x6xf32>
    %12 = arith.maximumf %10, %11 : vector<4x5x6xf32>
    %c0_19 = arith.constant 0 : index
    %c2_20 = arith.constant 2 : index
    %c0_21 = arith.constant 0 : index
    %13 = tpu.strided_load %arg3[%c0_19, %c2_20, %c0_21] {strides = array<i32: 1, 3, 1>} : memref<4x16x6xf32, #tpu.memory_space<vmem>>, vector<4x5x6xf32>
    %14 = arith.maximumf %12, %13 : vector<4x5x6xf32>
    %15 = tpu.transpose %14, [0, 2, 1] : vector<4x5x6xf32> -> vector<4x6x5xf32>
    %c0_22 = arith.constant 0 : index
    %c0_23 = arith.constant 0 : index
    %c0_24 = arith.constant 0 : index
    %16 = vector.load %arg2[%c0_22, %c0_23, %c0_24] : memref<4x6x6xf32, #tpu.memory_space<vmem>>, vector<4x6x5xf32>
    tpu.vector_store %arg2[%c0_22, %c0_23, %c0_24], %15 {strides = array<i32>} : memref<4x6x6xf32, #tpu.memory_space<vmem>>, vector<4x6x5xf32>,
    %c0_25 = arith.constant 0 : index
    %c15_26 = arith.constant 15 : index
    %c0_27 = arith.constant 0 : index
    %17 = vector.load %arg3[%c0_25, %c15_26, %c0_27] : memref<4x16x6xf32, #tpu.memory_space<vmem>>, vector<4x1x6xf32>
    %18 = tpu.transpose %17, [0, 2, 1] : vector<4x1x6xf32> -> vector<4x6x1xf32>
    %c0_28 = arith.constant 0 : index
    %c0_29 = arith.constant 0 : index
    %c5_30 = arith.constant 5 : index
    %19 = vector.load %arg2[%c0_28, %c0_29, %c5_30] : memref<4x6x6xf32, #tpu.memory_space<vmem>>, vector<4x6x1xf32>
    tpu.vector_store %arg2[%c0_28, %c0_29, %c5_30], %18 {strides = array<i32>} : memref<4x6x6xf32, #tpu.memory_space<vmem>>, vector<4x6x1xf32>,
    return
  }
  func.func @transform_0(%arg0: i32) -> (i32, i32, i32) {
    %c0_i32 = arith.constant 0 : i32
    %c0_i32_0 = arith.constant 0 : i32
    %c0_i32_1 = arith.constant 0 : i32
    return %arg0, %c0_i32, %c0_i32_0 : i32, i32, i32
  }
  func.func @transform_1(%arg0: i32) -> (i32, i32, i32) {
    %c0_i32 = arith.constant 0 : i32
    %c0_i32_0 = arith.constant 0 : i32
    %c0_i32_1 = arith.constant 0 : i32
    return %arg0, %c0_i32, %c0_i32_0 : i32, i32, i32
  }
}

</mosaic_0001>

<bundles_post_ra>
// kernel: maxpool2d_ceil.1
= control target key start
LH: loop header
LB: loop body
LE: loop exit
PB: predicated region body
PF: predicated region fallthrough
CT: control target
= control target key end

     0   :  { %6 = vsyncpa [#allocation4], 0  ;;  %s1153_s0 = inlined_call_operand.hbm [shape: f32[8,16,16], index: 0, kind: input, shape index: {}]   ;;  %s1154_s1 = inlined_call_operand.vmem [shape: f32[8,6,6], index: 1, kind: output, shape index: {}]  }
   0x1   :  { %8 = vsyncpa [#allocation4 + $0x1], 0  ;;  %s1016_s6 = smov 0   ;;  %s1018_s7 = smov 0  }
   0x2   :  { %s1020_s8 = smov 0   ;;  %s1022_s9 = smov 0  }
   0x3 LB: > { %s867_s10 = sadd.s32 4294967295, %s1001_s9   ;;  %s1036_s11 = sadd.s32 1, %s1001_s9   ;;  %s1001_s9 = sphi %s1022_s9, %s1161_s9   ;;  %s997_s8 = sphi %s1020_s8, %s1160_s8   ;;  %s993_s7 = sphi %s1018_s7, %s1159_s7   ;;  %s989_s6 = sphi %s1016_s6, %s1158_s6  }
   0x4   : > { %s18_s12 = ssub.s32 %s1001_s9, %s1036_s11  ;;  %s21_s13 = sadd.s32 1, %s997_s8 }
   0x5   : > { %p19_p0 = scmp.eq.s32.totalorder %s18_s12, 0  ;;  %p28_p1 = scmp.ne.s32.totalorder %s997_s8, %s993_s7 }
   0x6   : > { %p29_p2 = scmp.eq.s32.totalorder %s1001_s9, 0  ;;  %p34_p3 = scmp.ne.s32.totalorder %s993_s7, %s989_s6 }
   0x7   : > { %s1046_s14 = scalar_select %p19_p0, %s997_s8, %s21_s13  }
   0x8   : > { %p1048_p4 = por %p29_p2, %p28_p1  ;;  %p35_p5 = scmp.eq.s32.totalorder %s867_s10, 0 }
   0x9   : > { %p900_p6 = scmp.lt.s32.totalorder %s1001_s9, 2  ;;  %s84_s17 = sand.u32 1, %s997_s8  }
   0xa   : > { %p1055_p7 = por %p35_p5, %p34_p3  ;;  %s871_s18 = sshll.u32 %s84_s17, 6 }
   0xb   : > { %s893_s19 = sshll.u32 %s1001_s9, 6  ;;  %s88_s23 = scalar_lea.vmem [#allocation3], %s871_s18 }
   0xc   : > { %s94_s22 = scalar_lea.hbm %s1153_s0, %s893_s19  ;;  %s97_s24 = sshll.u32 %s88_s23, 4  ;;  %s98_s24 = int_to_ptr.vmem [resolvable:$true] %s97_s24 }
   0xd   : > { %s95_s25 = sshll.u32 %s94_s22, 4  ;;  %p1066_p8 = pnand %p900_p6, %p1048_p4  ;;  %s96_s25 = int_to_ptr.hbm [resolvable:$true] %s95_s25 }
   0xe   : > { %p875_p9 = scmp.ge.s32.totalorder %s1001_s9, 1  ;;  %s85_s27 = scalar_lea.sflag [#allocation4], %s84_s17 }
   0xf   : > { %s937_s28 = sshra.s32 %s96_s25, 4  ;;  %p941_p11 = pneg %p1066_p8  ;;  %s938_s28 = int_to_ptr.hbm [resolvable:$true] %s937_s28 }
  0x10   : > { %s939_s29 = scalar_lea.hbm %s938_s28, 64  ;;  %s944_s3 = scalar_lea.hbm %s1153_s0, 128 }
  0x11   : > { %p940_p10 = scmp.ne.s32.totalorder %s938_s28, %s939_s29  ;;  %p945_p0 = scmp.lt.s32.totalorder %s938_s28, %s1153_s0 }
  0x12   : > { %p946_p1 = scmp.lt.s32.totalorder %s944_s3, %s939_s29 }
  0x13   : > { %p942_p12 = pnand %p941_p11, %p940_p10 }
  0x14   : > { %p947_p2 = por %p946_p1, %p945_p0 }
  0x15   : > { %p943_p13 = pneg %p942_p12 }
  0x17   : > { %p948_p3 = pnand %p947_p2, %p943_p13 }
  0x19   : > { %951 = shalt.err (!%p948_p3)
}
  0x1a   : > { %s1003_s6 = smov 128   ;;  %s1004_s12 = smov 8  }
  0x1b   : > { %899 = dma.hbm_to_vmem [thread:$0]  (!%p1066_p8), %s96_s25, 1024, %s98_s24, %s85_s27, %s1003_s6, %s1003_s6, %s1004_s12  }
  0x1c   : > { %p105_p4 = scmp.lt.s32.totalorder %s1001_s9, 3 }
  0x1e   : > { %p106_p5 = pnand %p875_p9, %p105_p4 }
  0x1f   : > { %s111_s13 = sand.u32 (!%p106_p5), 1, %s993_s7  }
  0x20   : > { %109 = sbr.rel (%p106_p5) target bundleno = 858 (0x35a), region = 24  ;;  %s876_s15 = sshll.u32 (!%p106_p5), %s111_s13, 6 }
  0x21   : > { %s112_s17 = scalar_lea.sflag (!%p106_p5), [#allocation4], %s111_s13  ;;  %s1085_s18 = scalar_lea.vmem (!%p106_p5), [#allocation3], %s876_s15 }
  0x25   : > { %984 = dma.done.wait (%p1055_p7), %s112_s17, 1024  }
  0x26   : > { %986 = vsyncadd (%p1055_p7), %s112_s17, 4294966272  ;;  %v310_v0 = vld [vmem:[%s1085_s18 + $0xf] sm:$0x1]  ;;  %v311_v1 = vld [vmem:[%s1085_s18 + $0x1f] sm:$0x1]  ;;  %s1005_s16 = smov 5  }
  0x27   : > { %314 = vxpose.xlu2.b32.start.end [1/1] (short) (narrow) %v310_v0, 16  ;;  %v880_v2 = vld [vmem:[%s1085_s18 + $0x20] ss:$3 sm:$0x1f]  ;;  %v313_v14 = vld [vmem:[%s1085_s18 + $0x3f] sm:$0x1] }
  0x28   : > { %v884_v3 = vld [vmem:[%s1085_s18 + $0x21] ss:$3 sm:$0x1f]  ;;  %v888_v5 = vld [vmem:[%s1085_s18 + $0x22] ss:$3 sm:$0x1f] }
  0x29   : > { %v159_v4 = vmax.f32 %v880_v2, %v884_v3  ;;  %v881_v7 = vld [vmem:[%s1085_s18 + $0x30] ss:$3 sm:$0x1f]  ;;  %v885_v8 = vld [vmem:[%s1085_s18 + $0x31] ss:$3 sm:$0x1f] }
  0x2a   : > { %v160_v9 = vmax.f32 %v881_v7, %v885_v8  ;;  %v889_v10 = vld [vmem:[%s1085_s18 + $0x32] ss:$3 sm:$0x1f]  ;;  %v142_v15 = vld [vmem:[%s1085_s18] ss:$3 sm:$0x1f] }
  0x2b   : > { %v171_v6 = vmax.f32 %v159_v4, %v888_v5  ;;  %v882_v16 = vld [vmem:[%s1085_s18 + $0x1] ss:$3 sm:$0x1f]  ;;  %v886_v18 = vld [vmem:[%s1085_s18 + $0x2] ss:$3 sm:$0x1f] }
  0x2c   : > { %v172_v11 = vmax.f32 %v160_v9, %v889_v10  ;;  %v157_v17 = vmax.f32 %v142_v15, %v882_v16  ;;  %v879_v20 = vld [vmem:[%s1085_s18 + $0x10] ss:$3 sm:$0x1f]  ;;  %v883_v21 = vld [vmem:[%s1085_s18 + $0x11] ss:$3 sm:$0x1f] }
  0x2d   : > { %237 = vxpose.xlu1.b32.start.end [1/1] (short) (narrow) %v171_v6, 16  ;;  %v158_v22 = vmax.f32 %v879_v20, %v883_v21  ;;  %v887_v23 = vld [vmem:[%s1085_s18 + $0x12] ss:$3 sm:$0x1f]  ;;  %v312_v25 = vld [vmem:[%s1085_s18 + $0x2f] sm:$0x1] }
  0x2e   : > { %v169_v19 = vmax.f32 %v157_v17, %v886_v18  ;;  %vm301_vm0 = vcmask 39936   ;;  %vm474_vm1 = vcmask 48168   ;;  %s877_s19 = sshll.u32 %s867_s10, 2  ;;  %vm642_vm2 = vcmask 37888  }
  0x2f   : > { %v170_v24 = vmax.f32 %v158_v22, %v887_v23  ;;  %p137_p6 = scmp.lt.s32.totalorder %s877_s19, 7  ;;  %vm795_vm3 = vcmask 46120  }
  0x31   : > { %s1163_s19 = smov (!%p137_p6, %s877_s19), 7 }
  0x32   : > { %s878_s20 = sshll.u32 %s1163_s19, 3 }
  0x33   : > { %s140_s23 = scalar_lea.vmem %s1154_s1, %s878_s20 }
  0x37   : > { %346 = vxpose.xlu2.b32.start.end [1/1] (short) (narrow) %v311_v1, 16 }
  0x3d   : > { %269 = vxpose.xlu1.b32.start.end [1/1] (short) (narrow) %v172_v11, 16 }
  0x4d   : > { %410 = vxpose.xlu1.b32.start.end [1/1] (short) (narrow) %v313_v14, 16 }
  0xc0   : > { %v330_v12 = vpop.trf.xlu2 }
  0xc1   : > { %450 = vrot.lane.b32.xlu2 %v330_v12, %s1005_s16 }
  0xc8   : > { %v331_v13 = vpop.trf.xlu2 }
  0xc9   : > { %452 = vrot.lane.b32.xlu0 %v331_v13, %s1005_s16 }
  0xd0   : > { %v362_v26 = vpop.trf.xlu2 }
  0xd1   : > { %v253_v28 = vpop.trf.xlu1 }
  0xd2   : > { %306 = vst.msk [vmem:[#allocation2 + $0x20] sm:$0xff] %vm301_vm0, %v253_v28 }
  0xd8   : > { %v363_v27 = vpop.trf.xlu2 }
  0xd9   : > { %456 = vrot.lane.b32.xlu1 %v363_v27, %s1005_s16  ;;  %v254_v29 = vpop.trf.xlu1 }
  0xda   : > { %307 = vst.msk [vmem:[#allocation2 + $0x28] sm:$0xff] %vm301_vm0, %v254_v29 }
  0xe1   : > { %v285_v30 = vpop.trf.xlu1 }
  0xe2   : > { %308 = vst.msk [vmem:[#allocation2 + $0x30] sm:$0xff] %vm301_vm0, %v285_v30 }
  0xe9   : > { %v286_v31 = vpop.trf.xlu1 }
  0xea   : > { %309 = vst.msk [vmem:[#allocation2 + $0x38] sm:$0xff] %vm301_vm0, %v286_v31 }
  0xeb   : > { %173 = vxpose.xlu0.b32.start.end [1/1] (short) (narrow) %v169_v19, 16 }
  0xf1   : > { %v426_v32 = vpop.trf.xlu1 }
  0xf9   : > { %v427_v33 = vpop.trf.xlu1 }
  0xfa   : > { %464 = vrot.lane.b32.xlu1 %v427_v33, %s1005_s16 }
  0xfb   : > { %205 = vxpose.xlu0.b32.start.end [1/1] (short) (narrow) %v170_v24, 16 }
 0x10b   : > { %378 = vxpose.xlu0.b32.start.end [1/1] (short) (narrow) %v312_v25, 16 }
 0x11b   : > { %v451_v36 = vpop.permute.xlu2 %450 }
 0x13b   : > { %v453_v34 = vpop.permute.xlu0 %452 }
 0x14b   : > { %v457_v42 = vpop.permute.xlu1 %456 }
 0x16c   : > { %v465_v48 = vpop.permute.xlu1 %464 }
 0x16d   : > { %482 = vst.msk [vmem:[#allocation2 + $0x38] sm:$0xff] %vm474_vm1, %v465_v48 }
 0x174   : > { %v650_v7 = vld [vmem:[#allocation2 + $0x3f] sm:$0x1] }
 0x18f   : > { %v189_v35 = vpop.trf.xlu0 }
 0x190   : > { %302 = vst.msk [vmem:[#allocation2] sm:$0xff] %vm301_vm0, %v189_v35 }
 0x191   : > { %475 = vst.msk [vmem:[#allocation2] sm:$0xff] %vm474_vm1, %v451_v36 }
 0x197   : > { %v190_v37 = vpop.trf.xlu0 }
 0x198   : > { %303 = vst.msk [vmem:[#allocation2 + $0x8] sm:$0xff] %vm301_vm0, %v190_v37 }
 0x199   : > { %476 = vst.msk [vmem:[#allocation2 + $0x8] sm:$0xff] %vm474_vm1, %v453_v34 }
 0x19f   : > { %v221_v38 = vpop.trf.xlu0 }
 0x1a0   : > { %304 = vst.msk [vmem:[#allocation2 + $0x10] sm:$0xff] %vm301_vm0, %v221_v38  ;;  %v483_v43 = vld [vmem:[#allocation2] ss:$3 sm:$0x1f]  ;;  %v647_v5 = vld [vmem:[#allocation2 + $0xf] sm:$0x1] }
 0x1a1   : > { %v491_v44 = vld [vmem:[#allocation2 + $0x1] ss:$3 sm:$0x1f]  ;;  %v503_v46 = vld [vmem:[#allocation2 + $0x2] ss:$3 sm:$0x1f] }
 0x1a2   : > { %v498_v45 = vmax.f32 %v483_v43, %v491_v44 }
 0x1a4   : > { %v510_v47 = vmax.f32 %v498_v45, %v503_v46 }
 0x1a7   : > { %v222_v39 = vpop.trf.xlu0 }
 0x1a8   : > { %305 = vst.msk [vmem:[#allocation2 + $0x18] sm:$0xff] %vm301_vm0, %v222_v39 }
 0x1a9   : > { %478 = vst.msk [vmem:[#allocation2 + $0x18] sm:$0xff] %vm474_vm1, %v457_v42 }
 0x1af   : > { %v394_v40 = vpop.trf.xlu0 }
 0x1b0   : > { %458 = vrot.lane.b32.xlu1 %v394_v40, %s1005_s16  ;;  %v648_v6 = vld [vmem:[#allocation2 + $0x1f] sm:$0x1] }
 0x1b7   : > { %v395_v41 = vpop.trf.xlu0 }
 0x1b8   : > { %460 = vrot.lane.b32.xlu2 %v395_v41, %s1005_s16 }
 0x1c0   : > { %454 = vrot.lane.b32.xlu2 %v362_v26, %s1005_s16 }
 0x1c8   : > { %462 = vrot.lane.b32.xlu2 %v426_v32, %s1005_s16 }
 0x1e5   : > { %514 = vxpose.xlu1.b32.start.end [1/1] (short) (narrow) %v510_v47, 8 }
 0x212   : > { %v461_v49 = vpop.permute.xlu2 %460 }
 0x213   : > { %480 = vst.msk [vmem:[#allocation2 + $0x28] sm:$0xff] %vm474_vm1, %v461_v49 }
 0x21a   : > { %v455_v50 = vpop.permute.xlu2 %454  ;;  %v649_v51 = vld [vmem:[#allocation2 + $0x2f] sm:$0x1] }
 0x21b   : > { %477 = vst.msk [vmem:[#allocation2 + $0x10] sm:$0xff] %vm474_vm1, %v455_v50  ;;  %715 = vxpose.xlu1.b32.start.end [1/1] (short) (narrow) %v649_v51, 8 }
 0x222   : > { %v459_v52 = vpop.permute.xlu1 %458  ;;  %v463_v53 = vpop.permute.xlu2 %462  ;;  %v485_v54 = vld [vmem:[#allocation2 + $0x10] ss:$3 sm:$0x1f]  ;;  %v493_v55 = vld [vmem:[#allocation2 + $0x11] ss:$3 sm:$0x1f] }
 0x223   : > { %479 = vst.msk [vmem:[#allocation2 + $0x20] sm:$0xff] %vm474_vm1, %v459_v52  ;;  %v499_v56 = vmax.f32 %v485_v54, %v493_v55  ;;  %v505_v57 = vld [vmem:[#allocation2 + $0x12] ss:$3 sm:$0x1f] }
 0x224   : > { %481 = vst.msk [vmem:[#allocation2 + $0x30] sm:$0xff] %vm474_vm1, %v463_v53 }
 0x225   : > { %v511_v58 = vmax.f32 %v499_v56, %v505_v57 }
 0x227   : > { %546 = vxpose.xlu0.b32.start.end [1/1] (short) (narrow) %v511_v58, 8 }
 0x22a   : > { %v487_v59 = vld [vmem:[#allocation2 + $0x20] ss:$3 sm:$0x1f]  ;;  %v495_v60 = vld [vmem:[#allocation2 + $0x21] ss:$3 sm:$0x1f] }
 0x22b   : > { %v500_v61 = vmax.f32 %v487_v59, %v495_v60  ;;  %v489_v62 = vld [vmem:[#allocation2 + $0x30] ss:$3 sm:$0x1f]  ;;  %v507_v63 = vld [vmem:[#allocation2 + $0x22] ss:$3 sm:$0x1f] }
 0x22c   : > { %v497_v0 = vld [vmem:[#allocation2 + $0x31] ss:$3 sm:$0x1f]  ;;  %v509_v3 = vld [vmem:[#allocation2 + $0x32] ss:$3 sm:$0x1f] }
 0x22d   : > { %v512_v1 = vmax.f32 %v500_v61, %v507_v63  ;;  %v501_v2 = vmax.f32 %v489_v62, %v497_v0 }
 0x22f   : > { %578 = vxpose.xlu2.b32.start.end [1/1] (short) (narrow) %v512_v1, 8  ;;  %v513_v4 = vmax.f32 %v501_v2, %v509_v3 }
 0x231   : > { %610 = vxpose.xlu0.b32.start.end [1/1] (short) (narrow) %v513_v4, 8 }
 0x237   : > { %651 = vxpose.xlu2.b32.start.end [1/1] (short) (narrow) %v647_v5, 8 }
 0x239   : > { %683 = vxpose.xlu0.b32.start.end [1/1] (short) (narrow) %v648_v6, 8 }
 0x23f   : > { %747 = vxpose.xlu2.b32.start.end [1/1] (short) (narrow) %v650_v7, 8 }
 0x289   : > { %v530_v8 = vpop.trf.xlu1 }
 0x28a   : > { %643 = vst.msk [vmem:[%s140_s23] sm:$0x3f] %vm642_vm2, %v530_v8 }
 0x2bf   : > { %v731_v9 = vpop.trf.xlu1 }
 0x2c0   : > { %787 = vrot.lane.b32.xlu2 %v731_v9, %s1005_s16 }
 0x2c8   : > { %v594_v10 = vpop.trf.xlu2 }
 0x2c9   : > { %645 = vst.msk [vmem:[%s140_s23 + $0x10] sm:$0x3f] %vm642_vm2, %v594_v10 }
 0x2cb   : > { %v562_v11 = vpop.trf.xlu0 }
 0x2cc   : > { %644 = vst.msk [vmem:[%s140_s23 + $0x8] sm:$0x3f] %vm642_vm2, %v562_v11 }
 0x2d0   : > { %v667_v12 = vpop.trf.xlu2 }
 0x2d1   : > { %783 = vrot.lane.b32.xlu0 %v667_v12, %s1005_s16 }
 0x2d5   : > { %v626_v13 = vpop.trf.xlu0 }
 0x2d6   : > { %646 = vst.msk [vmem:[%s140_s23 + $0x18] sm:$0x3f] %vm642_vm2, %v626_v13 }
 0x2d8   : > { %v763_v15 = vpop.trf.xlu2 }
 0x2dd   : > { %v699_v14 = vpop.trf.xlu0 }
 0x2de   : > { %785 = vrot.lane.b32.xlu1 %v699_v14, %s1005_s16 }
 0x2e6   : > { %789 = vrot.lane.b32.xlu1 %v763_v15, %s1005_s16 }
 0x31a   : > { %v788_v17 = vpop.permute.xlu2 %787 }
 0x31b   : > { %798 = vst.msk [vmem:[%s140_s23 + $0x10] sm:$0x3f] %vm795_vm3, %v788_v17 }
 0x343   : > { %v784_v16 = vpop.permute.xlu0 %783 }
 0x344   : > { %796 = vst.msk [vmem:[%s140_s23] sm:$0x3f] %vm795_vm3, %v784_v16 }
 0x350   : > { %v786_v18 = vpop.permute.xlu1 %785 }
 0x351   : > { %797 = vst.msk [vmem:[%s140_s23 + $0x8] sm:$0x3f] %vm795_vm3, %v786_v18 }
 0x358   : > { %v790_v19 = vpop.permute.xlu1 %789 }
 0x359   : > { %799 = vst.msk [vmem:[%s140_s23 + $0x18] sm:$0x3f] %vm795_vm3, %v790_v19 }
 0x35a PF: > { %p11_p7 = scmp.ge.s32.totalorder %s1036_s11, 4   ;;  %s1158_s6 = smov %s993_s7 }
 0x35b   : > { %s1159_s7 = smov %s997_s8  ;;  %s1160_s8 = smov %s1046_s14 }
 0x35c   : > { %s1161_s9 = smov %s1036_s11  ;;  %13 = sbr.rel (!%p11_p7) target bundleno = 3 (0x3), region = 86 }
 0x361   :  { %822 = vsyncpa [#allocation4], 1 }
 0x362   :  { %824 = vsyncpa [#allocation4 + $0x1], 1 }

</bundles_post_ra>
